<compile_context>
chip_gen: v5e
topology: v5e:2x2
jax: 0.10.0
libtpu: 0.0.40
codegen_flags: <defaults>
</compile_context>

<pallas_src>
import jax
import jax.numpy as jnp
from jax.experimental import pallas as pl
from jax.experimental.pallas import tpu as pltpu


# ----------------------------- kernels --------------------------------------


def _sincos_split_kernel(x_ref, o_ref):
    """Write sin(x) (grid h==0) or cos(x) (h==1) for one lane-dense block."""
    h = pl.program_id(2)
    x = x_ref[...].astype(jnp.float32)

    @pl.when(h == 0)
    def _():
        o_ref[...] = jnp.sin(x).astype(o_ref.dtype)

    @pl.when(h == 1)
    def _():
        o_ref[...] = jnp.cos(x).astype(o_ref.dtype)


def _sincos_two_out_kernel(x_ref, sin_ref, cos_ref):
    """Fallback for ragged widths (not a multiple of 128): two dense outputs."""
    x = x_ref[...].astype(jnp.float32)
    sin_ref[...] = jnp.sin(x).astype(sin_ref.dtype)
    cos_ref[...] = jnp.cos(x).astype(cos_ref.dtype)


def _stack_reduce_kernel(x_ref, ws_ref, wc_ref, b_ref, o_ref):
    """Fused sin/cos stack + 1x1 conv, spatial in lanes.

    x:(1, C, ts), ws/wc:(C, C) (sin / cos halves of the conv weight, [out, in]),
    b:(C, 1)  ->  o:(1, C, ts) = ws @ sin(x) + wc @ cos(x) + b.
    """
    x = x_ref[0].astype(jnp.float32)            # (C, ts): lanes = flattened spatial
    sn = jnp.sin(x)
    cs = jnp.cos(x)
    ws = ws_ref[...].astype(jnp.float32)
    wc = wc_ref[...].astype(jnp.float32)
    b = b_ref[...].astype(jnp.float32)          # (C, 1)
    c_dim = x.shape[0]

    if c_dim <= 32:
        # Tiny channel count: 2C broadcast-FMAs on the VPU (the MXU would be ~empty).
        acc = jnp.broadcast_to(b, sn.shape)
        for c in range(c_dim):                  # static unroll, C is small
            acc = acc + ws[:, c:c + 1] * sn[c:c + 1, :]
            acc = acc + wc[:, c:c + 1] * cs[c:c + 1, :]
    else:
        # Large channel count: use the MXU; lane axis stays spatial so stores are dense.
        acc = (jnp.dot(ws, sn, preferred_element_type=jnp.float32)
               + jnp.dot(wc, cs, preferred_element_type=jnp.float32) + b)

    o_ref[0] = acc.astype(o_ref.dtype)


# --------------------------- tiling helpers ----------------------------------


def _pick_lane_tile(extent, max_elems):
    """Largest multiple-of-128 divisor of `extent` that is <= max_elems.

    Falls back to the full extent (always a legal block dim) when `extent` is not
    a multiple of 128 (or is <= 128).
    """
    if extent <= 128 or extent % 128 != 0:
        return extent
    limit = min(extent, max(128, (max_elems // 128) * 128))
    best = 128
    t = 256
    while t <= limit:
        if extent % t == 0:
            best = t
        t += 128
    return best


def _pick_row_tile(n, max_rows=256):
    """Row (sublane) tile: full extent for small n, else a multiple of 8."""
    if n <= max_rows:
        return n
    return (max_rows // 8) * 8


# ------------------------------ wrapper ---------------------------------------


def stack_sin_cos(x, weight=None, bias=None, *, reduce_channels=False,
                  block_bytes=2 << 20):
    """x: (N, L) or (N, C, *spatial), channel_axis=1 (PyTorch convention)."""
    orig_shape = x.shape
    if x.ndim == 2:
        x = x[:, None, :]                       # (N, 1, L), as in the PyTorch module
    N, C = x.shape[0], x.shape[1]
    spatial = x.shape[2:]
    S = 1
    for d in spatial:
        S *= int(d)
    itemsize = jnp.dtype(x.dtype).itemsize

    if reduce_channels:
        assert weight is not None and bias is not None
        w = jnp.asarray(weight, jnp.float32).reshape(C, 2 * C)   # (Cout, Cin)
        w_sin = w[:, :C]                                         # applied to sin half
        w_cos = w[:, C:]                                         # applied to cos half
        b = jnp.asarray(bias, jnp.float32).reshape(C, 1)

        x3 = x.reshape(N, C, S)                                  # free reshape, no copy
        budget = max(128, block_bytes // max(1, C * itemsize))
        cap = S // 2 if S >= 256 else S                          # keep >= 2 spatial steps
        ts = _pick_lane_tile(S, min(budget, cap))
        grid = (N, S // ts)

        out = pl.pallas_call(
            _stack_reduce_kernel,
            out_shape=jax.ShapeDtypeStruct((N, C, S), x.dtype),
            grid_spec=pltpu.PrefetchScalarGridSpec(
                num_scalar_prefetch=0,
                grid=grid,
                in_specs=[
                    pl.BlockSpec((1, C, ts), lambda n, j: (n, 0, j)),
                    pl.BlockSpec((C, C), lambda n, j: (0, 0)),     # resident weights
                    pl.BlockSpec((C, C), lambda n, j: (0, 0)),
                    pl.BlockSpec((C, 1), lambda n, j: (0, 0)),
                ],
                out_specs=pl.BlockSpec((1, C, ts), lambda n, j: (n, 0, j)),
            ),
            compiler_params=pltpu.CompilerParams(
                dimension_semantics=("parallel", "parallel")),
        )(x3, w_sin, w_cos, b)
        return out.reshape(orig_shape)

    # ---------------- non-reduce: y = cat([sin(x), cos(x)], dim=1) ----------------
    width = C * S
    x2 = x.reshape(N, width)                                     # free reshape, no copy
    bn = _pick_row_tile(N)

    if width % 128 == 0:
        # Lane-dense path: output viewed as (N, 2*width); the sin half occupies
        # columns [0, width), the cos half [width, 2*width) -- exactly the memory
        # layout of (N, 2C, *spatial), so the final reshape is free.
        budget = max(128, block_bytes // max(1, bn * itemsize))
        cap = width // 2 if width >= 256 else width              # keep >= 2 col steps
        tw = _pick_lane_tile(width, min(budget, cap))
        nj = width // tw

        out2 = pl.pallas_call(
            _sincos_split_kernel,
            out_shape=jax.ShapeDtypeStruct((N, 2 * width), x.dtype),
            grid_spec=pltpu.PrefetchScalarGridSpec(
                num_scalar_prefetch=0,
                grid=(pl.cdiv(N, bn), nj, 2),
                # input block stays resident across the innermost h axis
                in_specs=[pl.BlockSpec((bn, tw), lambda i, j, h: (i, j))],
                out_specs=pl.BlockSpec((bn, tw), lambda i, j, h: (i, h * nj + j)),
            ),
            compiler_params=pltpu.CompilerParams(
                dimension_semantics=("parallel", "parallel", "arbitrary")),
        )(x2)
    else:
        # Ragged width (< 128 or not a multiple of 128): dense two-output fallback.
        # TODO(synk): this fallback pays one extra XLA concat copy; the width%128==0
        # path above is copy-free.
        sin2, cos2 = pl.pallas_call(
            _sincos_two_out_kernel,
            out_shape=(jax.ShapeDtypeStruct((N, width), x.dtype),
                       jax.ShapeDtypeStruct((N, width), x.dtype)),
            grid_spec=pltpu.PrefetchScalarGridSpec(
                num_scalar_prefetch=0,
                grid=(pl.cdiv(N, bn),),
                in_specs=[pl.BlockSpec((bn, width), lambda i: (i, 0))],
                out_specs=[pl.BlockSpec((bn, width), lambda i: (i, 0)),
                           pl.BlockSpec((bn, width), lambda i: (i, 0))],
            ),
            compiler_params=pltpu.CompilerParams(
                dimension_semantics=("parallel",)),
        )(x2)
        out2 = jnp.concatenate([sin2[:, None, :], cos2[:, None, :]], axis=1)
        out2 = out2.reshape(N, 2 * width)

    return out2.reshape((N, 2 * C) + spatial)


# ------------------------------ reference -------------------------------------


def _reference(x, weight, bias, reduce_channels):
    """Pure-JAX reference matching the PyTorch forward (channel_axis=1)."""
    orig_shape = x.shape
    if x.ndim == 2:
        x = x[:, None, :]
    y = jnp.concatenate([jnp.sin(x), jnp.cos(x)], axis=1)
    if not reduce_channels:
        return y
    C = x.shape[1]
    w = jnp.asarray(weight, jnp.float32).reshape(C, 2 * C)        # (Cout, Cin)
    y = jnp.einsum("oc,nc...->no...", w, y.astype(jnp.float32))
    y = y + jnp.asarray(bias, jnp.float32).reshape((1, C) + (1,) * (y.ndim - 2))
    return y.astype(x.dtype).reshape(orig_shape)


if __name__ == "__main__":
    key = jax.random.PRNGKey(0)
    kx, kw, kb, kx2, kw2, kb2 = jax.random.split(key, 6)

    # (N, C, H, W) input -> Conv2d branch of the module.
    N, C, H, W = 2, 4, 16, 16
    x = jax.random.normal(kx, (N, C, H, W), dtype=jnp.float32)

    # Deterministic 1x1 Conv2d(2C -> C) parameters (PyTorch-style uniform init).
    fan_in = 2 * C
    bound = 1.0 / (fan_in ** 0.5)
    weight = jax.random.uniform(kw, (C, 2 * C, 1, 1), jnp.float32, -bound, bound)
    bias = jax.random.uniform(kb, (C,), jnp.float32, -bound, bound)

    # reduce_channels=True: sin/cos stack fused with the 1x1 conv (VPU FMA path).
    out_reduce = jax.block_until_ready(
        stack_sin_cos(x, weight, bias, reduce_channels=True))
    assert out_reduce.shape == x.shape
    assert jnp.allclose(out_reduce, _reference(x, weight, bias, True),
                        atol=1e-5, rtol=1e-5)

    # reduce_channels=False: lane-dense split-column path.
    out_stack = jax.block_until_ready(stack_sin_cos(x, reduce_channels=False))
    assert out_stack.shape == (N, 2 * C, H, W)
    assert jnp.allclose(out_stack, _reference(x, None, None, False),
                        atol=1e-5, rtol=1e-5)

    # (N, L) input -> Conv1d branch (C=1); exercises the ragged-width fallback.
    N2, L = 2, 32
    x2 = jax.random.normal(kx2, (N2, L), dtype=jnp.float32)
    bound2 = 1.0 / (2.0 ** 0.5)
    w2 = jax.random.uniform(kw2, (1, 2, 1), jnp.float32, -bound2, bound2)
    b2 = jax.random.uniform(kb2, (1,), jnp.float32, -bound2, bound2)

    out2_stack = jax.block_until_ready(stack_sin_cos(x2, reduce_channels=False))
    assert out2_stack.shape == (N2, 2, L)
    assert jnp.allclose(out2_stack, _reference(x2, None, None, False),
                        atol=1e-5, rtol=1e-5)

    out2_reduce = jax.block_until_ready(
        stack_sin_cos(x2, w2, b2, reduce_channels=True))
    assert out2_reduce.shape == (N2, L)
    assert jnp.allclose(out2_reduce, _reference(x2, w2, b2, True),
                        atol=1e-5, rtol=1e-5)

    print("KERNEL_OK")
</pallas_src>

<mosaic_0001>
module attributes {stable_mosaic.version = 11 : i64} {
  func.func @_stack_reduce_kernel(%arg0: i32, %arg1: i32, %arg2: memref<1x4x128xf32, #tpu.memory_space<vmem>>, %arg3: memref<4x4xf32, #tpu.memory_space<vmem>>, %arg4: memref<4x4xf32, #tpu.memory_space<vmem>>, %arg5: memref<4x1xf32, #tpu.memory_space<vmem>>, %arg6: memref<1x4x128xf32, #tpu.memory_space<vmem>>) attributes {dimension_semantics = [#tpu.dimension_semantics<parallel>, #tpu.dimension_semantics<parallel>], iteration_bounds = array<i64: 2, 2>, scalar_prefetch = 0 : i64, scratch_operands = 0 : i64, tpu.core_type = #tpu.core_type<tc>, window_params = [{transform_indices = @transform_0, window_bounds = array<i64: 1, 4, 128>}, {pipeline_mode = #tpu.pipeline_mode<synchronous>, transform_indices = @transform_1, window_bounds = array<i64: 4, 4>}, {pipeline_mode = #tpu.pipeline_mode<synchronous>, transform_indices = @transform_2, window_bounds = array<i64: 4, 4>}, {pipeline_mode = #tpu.pipeline_mode<synchronous>, transform_indices = @transform_3, window_bounds = array<i64: 4, 1>}, {transform_indices = @transform_4, window_bounds = array<i64: 1, 4, 128>}]} {
    %c0 = arith.constant 0 : index
    %c0_0 = arith.constant 0 : index
    %c0_1 = arith.constant 0 : index
    %0 = vector.load %arg2[%c0, %c0_0, %c0_1] : memref<1x4x128xf32, #tpu.memory_space<vmem>>, vector<1x4x128xf32>
    %1 = vector.shape_cast %0 : vector<1x4x128xf32> to vector<4x128xf32>
    %2 = math.sin %1 : vector<4x128xf32>
    %3 = math.cos %1 : vector<4x128xf32>
    %c0_2 = arith.constant 0 : index
    %c0_3 = arith.constant 0 : index
    %4 = vector.load %arg3[%c0_2, %c0_3] : memref<4x4xf32, #tpu.memory_space<vmem>>, vector<4x4xf32>
    %c0_4 = arith.constant 0 : index
    %c0_5 = arith.constant 0 : index
    %5 = vector.load %arg4[%c0_4, %c0_5] : memref<4x4xf32, #tpu.memory_space<vmem>>, vector<4x4xf32>
    %c0_6 = arith.constant 0 : index
    %c0_7 = arith.constant 0 : index
    %6 = vector.load %arg5[%c0_6, %c0_7] : memref<4x1xf32, #tpu.memory_space<vmem>>, vector<4x1xf32>
    %7 = vector.shape_cast %6 : vector<4x1xf32> to vector<4x1xf32>
    %8 = vector.broadcast %7 : vector<4x1xf32> to vector<4x128xf32>
    %9 = vector.extract_strided_slice %4 {offsets = [0, 0], sizes = [4, 1], strides = [1, 1]} : vector<4x4xf32> to vector<4x1xf32>
    %10 = vector.extract_strided_slice %2 {offsets = [0, 0], sizes = [1, 128], strides = [1, 1]} : vector<4x128xf32> to vector<1x128xf32>
    %11 = vector.broadcast %9 : vector<4x1xf32> to vector<4x128xf32>
    %12 = vector.broadcast %10 : vector<1x128xf32> to vector<4x128xf32>
    %13 = arith.mulf %11, %12 : vector<4x128xf32>
    %14 = arith.addf %8, %13 : vector<4x128xf32>
    %15 = vector.extract_strided_slice %5 {offsets = [0, 0], sizes = [4, 1], strides = [1, 1]} : vector<4x4xf32> to vector<4x1xf32>
    %16 = vector.extract_strided_slice %3 {offsets = [0, 0], sizes = [1, 128], strides = [1, 1]} : vector<4x128xf32> to vector<1x128xf32>
    %17 = vector.broadcast %15 : vector<4x1xf32> to vector<4x128xf32>
    %18 = vector.broadcast %16 : vector<1x128xf32> to vector<4x128xf32>
    %19 = arith.mulf %17, %18 : vector<4x128xf32>
    %20 = arith.addf %14, %19 : vector<4x128xf32>
    %21 = vector.extract_strided_slice %4 {offsets = [0, 1], sizes = [4, 1], strides = [1, 1]} : vector<4x4xf32> to vector<4x1xf32>
    %22 = vector.extract_strided_slice %2 {offsets = [1, 0], sizes = [1, 128], strides = [1, 1]} : vector<4x128xf32> to vector<1x128xf32>
    %23 = vector.broadcast %21 : vector<4x1xf32> to vector<4x128xf32>
    %24 = vector.broadcast %22 : vector<1x128xf32> to vector<4x128xf32>
    %25 = arith.mulf %23, %24 : vector<4x128xf32>
    %26 = arith.addf %20, %25 : vector<4x128xf32>
    %27 = vector.extract_strided_slice %5 {offsets = [0, 1], sizes = [4, 1], strides = [1, 1]} : vector<4x4xf32> to vector<4x1xf32>
    %28 = vector.extract_strided_slice %3 {offsets = [1, 0], sizes = [1, 128], strides = [1, 1]} : vector<4x128xf32> to vector<1x128xf32>
    %29 = vector.broadcast %27 : vector<4x1xf32> to vector<4x128xf32>
    %30 = vector.broadcast %28 : vector<1x128xf32> to vector<4x128xf32>
    %31 = arith.mulf %29, %30 : vector<4x128xf32>
    %32 = arith.addf %26, %31 : vector<4x128xf32>
    %33 = vector.extract_strided_slice %4 {offsets = [0, 2], sizes = [4, 1], strides = [1, 1]} : vector<4x4xf32> to vector<4x1xf32>
    %34 = vector.extract_strided_slice %2 {offsets = [2, 0], sizes = [1, 128], strides = [1, 1]} : vector<4x128xf32> to vector<1x128xf32>
    %35 = vector.broadcast %33 : vector<4x1xf32> to vector<4x128xf32>
    %36 = vector.broadcast %34 : vector<1x128xf32> to vector<4x128xf32>
    %37 = arith.mulf %35, %36 : vector<4x128xf32>
    %38 = arith.addf %32, %37 : vector<4x128xf32>
    %39 = vector.extract_strided_slice %5 {offsets = [0, 2], sizes = [4, 1], strides = [1, 1]} : vector<4x4xf32> to vector<4x1xf32>
    %40 = vector.extract_strided_slice %3 {offsets = [2, 0], sizes = [1, 128], strides = [1, 1]} : vector<4x128xf32> to vector<1x128xf32>
    %41 = vector.broadcast %39 : vector<4x1xf32> to vector<4x128xf32>
    %42 = vector.broadcast %40 : vector<1x128xf32> to vector<4x128xf32>
    %43 = arith.mulf %41, %42 : vector<4x128xf32>
    %44 = arith.addf %38, %43 : vector<4x128xf32>
    %45 = vector.extract_strided_slice %4 {offsets = [0, 3], sizes = [4, 1], strides = [1, 1]} : vector<4x4xf32> to vector<4x1xf32>
    %46 = vector.extract_strided_slice %2 {offsets = [3, 0], sizes = [1, 128], strides = [1, 1]} : vector<4x128xf32> to vector<1x128xf32>
    %47 = vector.broadcast %45 : vector<4x1xf32> to vector<4x128xf32>
    %48 = vector.broadcast %46 : vector<1x128xf32> to vector<4x128xf32>
    %49 = arith.mulf %47, %48 : vector<4x128xf32>
    %50 = arith.addf %44, %49 : vector<4x128xf32>
    %51 = vector.extract_strided_slice %5 {offsets = [0, 3], sizes = [4, 1], strides = [1, 1]} : vector<4x4xf32> to vector<4x1xf32>
    %52 = vector.extract_strided_slice %3 {offsets = [3, 0], sizes = [1, 128], strides = [1, 1]} : vector<4x128xf32> to vector<1x128xf32>
    %53 = vector.broadcast %51 : vector<4x1xf32> to vector<4x128xf32>
    %54 = vector.broadcast %52 : vector<1x128xf32> to vector<4x128xf32>
    %55 = arith.mulf %53, %54 : vector<4x128xf32>
    %56 = arith.addf %50, %55 : vector<4x128xf32>
    %c0_8 = arith.constant 0 : index
    %c0_9 = arith.constant 0 : index
    %c0_10 = arith.constant 0 : index
    %57 = vector.load %arg6[%c0_8, %c0_9, %c0_10] : memref<1x4x128xf32, #tpu.memory_space<vmem>>, vector<1x4x128xf32>
    %58 = vector.shape_cast %57 : vector<1x4x128xf32> to vector<4x128xf32>
    %59 = vector.shape_cast %56 : vector<4x128xf32> to vector<1x4x128xf32>
    tpu.vector_store %arg6[%c0_8, %c0_9, %c0_10], %59 {strides = array<i32>} : memref<1x4x128xf32, #tpu.memory_space<vmem>>, vector<1x4x128xf32>,
    return
  }
  func.func @transform_0(%arg0: i32, %arg1: i32) -> (i32, i32, i32) {
    %c0_i32 = arith.constant 0 : i32
    %c0_i32_0 = arith.constant 0 : i32
    return %arg0, %c0_i32, %arg1 : i32, i32, i32
  }
  func.func @transform_1(%arg0: i32, %arg1: i32) -> (i32, i32) {
    %c0_i32 = arith.constant 0 : i32
    %c0_i32_0 = arith.constant 0 : i32
    %c0_i32_1 = arith.constant 0 : i32
    return %c0_i32, %c0_i32_0 : i32, i32
  }
  func.func @transform_2(%arg0: i32, %arg1: i32) -> (i32, i32) {
    %c0_i32 = arith.constant 0 : i32
    %c0_i32_0 = arith.constant 0 : i32
    %c0_i32_1 = arith.constant 0 : i32
    return %c0_i32, %c0_i32_0 : i32, i32
  }
  func.func @transform_3(%arg0: i32, %arg1: i32) -> (i32, i32) {
    %c0_i32 = arith.constant 0 : i32
    %c0_i32_0 = arith.constant 0 : i32
    %c0_i32_1 = arith.constant 0 : i32
    return %c0_i32, %c0_i32_0 : i32, i32
  }
  func.func @transform_4(%arg0: i32, %arg1: i32) -> (i32, i32, i32) {
    %c0_i32 = arith.constant 0 : i32
    %c0_i32_0 = arith.constant 0 : i32
    return %arg0, %c0_i32, %arg1 : i32, i32, i32
  }
}

</mosaic_0001>

<bundles_post_ra>
// kernel: tpu_custom_call.1
= control target key start
LH: loop header
LB: loop body
LE: loop exit
PB: predicated region body
PF: predicated region fallthrough
CT: control target
= control target key end

     0   :  { %s1312_s0 = inlined_call_operand.hbm [shape: f32[2,4,256], index: 0, kind: input, shape index: {}]   ;;  %s1313_s1 = inlined_call_operand.vmem [shape: f32[4,4], index: 1, kind: input, shape index: {}]   ;;  %s1314_s2 = inlined_call_operand.hbm [shape: f32[4,4], index: 2, kind: input, shape index: {}]   ;;  %s1315_s3 = inlined_call_operand.vmem [shape: f32[4,1], index: 3, kind: input, shape index: {}]   ;;  %s1316_s4 = inlined_call_operand.hbm [shape: f32[2,4,256], index: 4, kind: output, shape index: {}]  }
   0x1   :  { %1324 = sst [smem:[#allocation16_spill]] %s1314_s2 }
   0x2   :  { %1325 = sst [smem:[#allocation17_spill]] %s1316_s4 }
   0x3   :  { %9 = vsyncpa [#allocation3], 0 }
   0x4   :  { %11 = vsyncpa [#allocation3 + $0x1], 0 }
   0x5   :  { %12 = vsyncpa [#allocation6], 0 }
   0x6   :  { %13 = vsyncpa [#allocation4], 0 }
   0x7   :  { %15 = vsyncpa [#allocation4 + $0x1], 0  ;;  %s1069_s15 = smov 0   ;;  %s1071_s16 = smov 0  }
   0x8   :  { %s1073_s17 = smov 0   ;;  %s1075_s18 = smov 0  }
   0x9   :  { %s1077_s19 = smov 0   ;;  %s1079_s20 = smov 0  }
   0xa   :  { %s1081_s21 = smov 0   ;;  %s1083_s22 = smov 0  }
   0xb LB: > { %1326 = sst [smem:[#allocation11_spill]] %s1003_s15  ;;  %s738_s23 = sadd.s32 4294967295, %s1031_s22   ;;  %s1031_s22 = sphi %s1083_s22, %s21_s22   ;;  %s1027_s21 = sphi %s1081_s21, %s1353_s21   ;;  %s1023_s20 = sphi %s1079_s20, %s1352_s20   ;;  %s1019_s19 = sphi %s1077_s19, %s1351_s19   ;;  %s1015_s18 = sphi %s1075_s18, %s1350_s18   ;;  %s1011_s17 = sphi %s1073_s17, %s1349_s17   ;;  %s1007_s16 = sphi %s1071_s16, %s1348_s16   ;;  %s1003_s15 = sphi %s1069_s15, %s1347_s15  }
   0xc   : > { %s739_s24 = sadd.s32 4294967294, %s1031_s22   ;;  %p55_p0 = scmp.ne.s32.totalorder %s1007_s16, %s1003_s15 }
   0xd   : > { %p1113_p1 = scmp.eq.s32.totalorder %s738_s23, 0  ;;  %p1117_p2 = scmp.eq.s32.totalorder %s738_s23, 3 }
   0xe   : > { %p150_p3 = scmp.eq.s32.totalorder %s739_s24, 3  ;;  %p740_p5 = scmp.ge.s32.totalorder %s1031_s22, 1 }
   0xf   : > { %p1123_p4 = por %p1113_p1, %p55_p0  ;;  %p157_p7 = scmp.lt.s32.totalorder %s1031_s22, 5 }
  0x10   : > { %p1128_p6 = por %p150_p3, %p55_p0  ;;  %s1332_s2 = sld [smem:[#allocation16_spill]] }
  0x11   : > { %p1136_p8 = pnand %p740_p5, %p157_p7  ;;  %s1033_s7 = smov [#allocation5]  }
  0x12   : > { %s1330_s28 = scalar_select %p1128_p6, 1, 0 }
  0x13   : > { %p769_p9 = pneg %p1136_p8  ;;  %s174_s8 = sshll.u32 %s1033_s7, 4  ;;  %s175_s8 = int_to_ptr.vmem [resolvable:$true] %s174_s8 }
  0x14   : > { %1331 = sst [smem:[#allocation12_spill]] %s1330_s28  ;;  %s30_s9 = sadd.s32 1, %s1023_s20 }
  0x15   : > { %p770_p10 = pnand %p769_p9, %p1113_p1  ;;  %p31_p11 = scmp.ge.s32.totalorder %s30_s9, 2 }
  0x16   : > { %s172_s5 = sshll.u32 %s1332_s2, 4  ;;  %s33_s10 = sadd.s32 1, %s1027_s21  ;;  %s173_s5 = int_to_ptr.hbm [resolvable:$true] %s172_s5 }
  0x17   : > { %772 = dma.hbm_to_vmem [thread:$0]  (!%p770_p10), %s173_s5, 64, %s175_s8, [#allocation6]  }
  0x18   : > { %s42_s11 = sadd.s32 1, %s1011_s17  ;;  %p49_p12 = scmp.ne.s32.totalorder %s1011_s17, %s1007_s16 }
  0x19   : > { %s1355_s9 = smov (%p31_p11, %s30_s9), 0  ;;  %s1357_s10 = smov (!%p31_p11, %s33_s10), %s1027_s21 }
  0x1a   : > { %1334 = sst [smem:[#allocation13_spill]] %s1355_s9  ;;  %s38_s12 = ssub.s32 %s1023_s20, %s1355_s9 }
  0x1b   : > { %p50_p13 = scmp.eq.s32.totalorder %s1031_s22, 0  ;;  %p35_p0 = scmp.ge.s32.totalorder %s1357_s10, 2 }
  0x1c   : > { %p1157_p3 = por %p1117_p2, %p49_p12  ;;  %p782_p7 = scmp.lt.s32.totalorder %s1031_s22, 4 }
  0x1d   : > { %p1161_p5 = por %p50_p13, %p49_p12  ;;  %s1359_s10 = smov (%p35_p0, %s1357_s10), 0 }
  0x1e   : > { %s1335_s13 = scalar_select %p1157_p3, 1, 0 }
  0x1f   : > { %1338 = sst [smem:[#allocation15_spill]] %s1359_s10  ;;  %s188_s23 = sand.u32 1, %s1011_s17  }
  0x20   : > { %1336 = sst [smem:[#allocation14_spill]] %s1335_s13  ;;  %s744_s24 = sshll.u32 %s1027_s21, 1 }
  0x21   : > { %s37_s29 = ssub.s32 %s1027_s21, %s1359_s10  ;;  %s743_s5 = sshll.u32 %s188_s23, 2 }
  0x22   : > { %s39_s30 = sor.u32 %s38_s12, %s37_s29  ;;  %s196_s26 = sadd.s32 %s1023_s20, %s744_s24 }
  0x23   : > { %p40_p9 = scmp.eq.s32.totalorder %s39_s30, 0  ;;  %s192_s7 = scalar_lea.vmem [#allocation2], %s743_s5 }
  0x24   : > { %s202_s8 = sshll.u32 %s192_s7, 4  ;;  %s745_s9 = sshll.u32 %s196_s26, 2  ;;  %s203_s8 = int_to_ptr.vmem [resolvable:$true] %s202_s8 }
  0x25   : > { %s1174_s2 = scalar_select %p40_p9, %s1011_s17, %s42_s11  }
  0x26   : > { %s198_s13 = scalar_lea.hbm %s1312_s0, %s745_s9  ;;  %p774_p2 = pnand %p782_p7, %p1161_p5 }
  0x27   : > { %s200_s4 = sshll.u32 %s198_s13, 4  ;;  %s189_s10 = scalar_lea.sflag [#allocation3], %s188_s23  ;;  %s201_s4 = int_to_ptr.hbm [resolvable:$true] %s200_s4 }
  0x28   : > { %776 = dma.hbm_to_vmem [thread:$0]  (!%p774_p2), %s201_s4, 64, %s203_s8, %s189_s10  }
  0x29   : > { %211 = sbr.rel (%p1136_p8) target bundleno = 194 (0xc2), region = 36  ;;  %s1186_s11 = sand.u32 (!%p1136_p8), 1, %s1007_s16  }
  0x2a   : > { %s747_s12 = sshll.u32 (!%p1136_p8), %s1186_s11, 2  ;;  %s214_s15 = scalar_lea.sflag (!%p1136_p8), [#allocation3], %s1186_s11 }
  0x2b   : > { %s217_s28 = scalar_lea.vmem (!%p1136_p8), [#allocation2], %s747_s12 }
  0x2e   : > { %990 = dma.done.wait (%p1123_p4), %s214_s15, 64  }
  0x2f   : > { %992 = vsyncadd (%p1123_p4), %s214_s15, 4294967232 }
  0x30   : > { %994 = dma.done.wait (%p1113_p1), [#allocation6], 64  }
  0x31   : > { %996 = vsyncadd (%p1113_p1), [#allocation6], 4294967232  ;;  %v1034_v0 = vmov 0   ;;  %v1035_v1 = vmov 1   ;;  %v558_v2 = vld [vmem:[%s1313_s1] sm:$0xf] }
  0x32   : > { %860 = vset.pattern.permute.xlu0 %v1034_v0  ;;  %861 = vset.pattern.permute.xlu1 %v1034_v0  ;;  %v559_v3 = vld [vmem:[#allocation5] sm:$0xf]  ;;  %v1205_v4 = vld [vmem:[%s217_s28] sm:$0xf]  ;;  %v1036_v12 = vmov 2   ;;  %v1043_v35 = vmov 3  }
  0x33   : > { %863 = vset.pattern.permute.xlu2 %v1035_v1  ;;  %568 = vperm.xlu0 %860, %v558_v2   ;;  %v252_v5 = vand.u32 2139095040, %v1205_v4  ;;  %v249_v7 = vand.u32 2147483647, %v1205_v4  ;;  %v560_v8 = vld [vmem:[%s1315_s3] sm:$0xf]  ;;  %vm251_vm12 = vcmp.lt.s32.totalorder %v1205_v4, 0 }
  0x34   : > { %576 = vperm.xlu1 %861, %v559_v3   ;;  %590 = vperm.xlu2 %863, %v559_v3   ;;  %v1037_v18 = vmov 683565275   ;;  %v1038_v20 = vmov 2475754826   ;;  %v1039_v22 = vmov 2131351028  }
  0x35   : > { %v253_v6 = vshrl.u32 %v252_v5, 23  ;;  %v256_v11 = vand.u32 8388607, %v249_v7  ;;  %v1040_v24 = vmov 2102212464   ;;  %s757_s9 = sshll.u32 %s1019_s19, 1 }
  0x36   : > { %v1041_v26 = vmov 920167782   ;;  %v1042_v32 = vmov 1326507024   ;;  %vm1256_vm13 = vcmp.le.f32.partialorder %v249_v7, 0.7853982  ;;  %s636_s10 = sadd.s32 %s1015_s18, %s757_s9 }
  0x37   : > { %v750_v9 = vadd.s32 4294967169, %v253_v6  ;;  %v257_v15 = vor.u32 8388608, %v256_v11  ;;  %s758_s13 = sshll.u32 %s636_s10, 2  ;;  %s1341_s23 = sld [smem:[#allocation17_spill]] }
  0x38   : > { %s247_s29 = scalar_lea.vmem [#allocation7], %s747_s12  ;;  %s626_s26 = scalar_lea.sflag [#allocation4], %s1186_s11 }
  0x39   : > { %v259_v10 = vadd.s32 1, %v750_v9  ;;  %v1217_v34 = vshll.u32 %v257_v15, 8  ;;  %s640_s30 = sshll.u32 %s247_s29, 4  ;;  %s641_s30 = int_to_ptr.vmem [resolvable:$true] %s640_s30 }
  0x3b   : > { %563 = vperm.xlu0 %860, %v560_v8   ;;  %vm260_vm0 = vcmp.gt.s32.totalorder %v259_v10, 0  ;;  %v298_v47 = vand.u32 65535, %v1217_v34  ;;  %v299_v48 = vshrl.u32 %v1217_v34, 16 }
  0x3c   : > { %862 = vset.pattern.permute.xlu1 %v1035_v1  ;;  %864 = vset.pattern.permute.xlu2 %v1036_v12  ;;  %v261_v13 = vsel %vm260_vm0, %v259_v10, 0 }
  0x3d   : > { %583 = vperm.xlu1 %862, %v558_v2   ;;  %597 = vperm.xlu2 %864, %v558_v2   ;;  %v263_v14 = vand.u32 31, %v261_v13  ;;  %v1214_v16 = vshrl.u32 %v261_v13, 5  ;;  %s638_s24 = scalar_lea.hbm %s1341_s23, %s758_s13  ;;  %s949_s4 = scalar_lea.hbm %s1341_s23, 16 }
  0x3e   : > { %s642_s5 = sshll.u32 %s638_s24, 4  ;;  %s643_s5 = int_to_ptr.hbm [resolvable:$true] %s642_s5 }
  0x3f   : > { %v264_v17 = vsub.s32 32, %v263_v14  ;;  %v266_v19 = vshll.u32 %v1037_v18, %v263_v14  ;;  %v269_v21 = vshll.u32 %v1038_v20, %v263_v14  ;;  %v272_v23 = vshll.u32 %v1039_v22, %v263_v14  ;;  %s943_s7 = sshra.s32 %s643_s5, 4  ;;  %s944_s7 = int_to_ptr.hbm [resolvable:$true] %s943_s7 }
  0x40   : > { %v275_v25 = vshll.u32 %v1040_v24, %v263_v14  ;;  %v278_v27 = vshll.u32 %v1041_v26, %v263_v14  ;;  %vm281_vm1 = vcmp.lt.s32.totalorder %v1214_v16, 1  ;;  %vm284_vm2 = vcmp.lt.s32.totalorder %v1214_v16, 4  ;;  %s945_s8 = scalar_lea.hbm %s944_s7, 4  ;;  %p950_p10 = scmp.lt.s32.totalorder %s944_s7, %s1341_s23 }
  0x41   : > { %v267_v28 = vshrl.u32 %v1038_v20, %v264_v17  ;;  %v270_v29 = vshrl.u32 %v1039_v22, %v264_v17  ;;  %v273_v30 = vshrl.u32 %v1040_v24, %v264_v17  ;;  %v276_v31 = vshrl.u32 %v1041_v26, %v264_v17  ;;  %p946_p1 = scmp.ne.s32.totalorder %s944_s7, %s945_s8  ;;  %p951_p11 = scmp.lt.s32.totalorder %s949_s4, %s945_s8 }
  0x42   : > { %v279_v33 = vshrl.u32 %v1042_v32, %v264_v17  ;;  %vm283_vm3 = vcmp.lt.s32.totalorder %v1214_v16, 3  ;;  %vm282_vm4 = vcmp.lt.s32.totalorder %v1214_v16, 2  ;;  %v265_v58 = vshrl.u32 %v1037_v18, %v264_v17 }
  0x43   : > { %865 = vset.pattern.permute.xlu0 %v1036_v12  ;;  %v268_v36 = vor.u32 %v267_v28, %v266_v19  ;;  %v271_v37 = vor.u32 %v270_v29, %v269_v21  ;;  %v274_v38 = vor.u32 %v273_v30, %v272_v23  ;;  %v277_v39 = vor.u32 %v276_v31, %v275_v25  ;;  %p947_p4 = pnand %p946_p1, %p1157_p3  ;;  %p952_p12 = por %p951_p11, %p950_p10 }
  0x44   : > { %604 = vperm.xlu0 %865, %v559_v3   ;;  %v280_v40 = vor.u32 %v279_v33, %v278_v27 }
  0x45   : > { %866 = vset.pattern.permute.xlu1 %v1043_v35  ;;  %867 = vset.pattern.permute.xlu2 %v1043_v35  ;;  %v289_v41 = vsel %vm281_vm1, %v268_v36, %v271_v37  ;;  %v293_v42 = vsel %vm281_vm1, %v271_v37, %v274_v38  ;;  %v290_v43 = vsel %vm284_vm2, %v277_v39, 920167782  ;;  %v286_v6 = vsel %vm284_vm2, %v274_v38, 2102212464  ;;  %p948_p8 = pneg %p947_p4 }
  0x46   : > { %611 = vperm.xlu1 %866, %v558_v2   ;;  %618 = vperm.xlu2 %867, %v559_v3   ;;  %v294_v44 = vsel %vm284_vm2, %v280_v40, 1326507024  ;;  %v291_v45 = vsel %vm283_vm3, %v274_v38, %v290_v43  ;;  %v285_v9 = vsel %vm281_vm1, %v265_v58, %v268_v36  ;;  %v287_v19 = vsel %vm283_vm3, %v271_v37, %v286_v6 }
  0x47   : > { %v295_v46 = vsel %vm283_vm3, %v277_v39, %v294_v44  ;;  %v292_v49 = vsel %vm282_vm4, %v289_v41, %v291_v45  ;;  %v288_v27 = vsel %vm282_vm4, %v285_v9, %v287_v19  ;;  %p953_p13 = pnand %p952_p12, %p948_p8 }
  0x48   : > { %v296_v50 = vsel %vm282_vm4, %v293_v42, %v295_v46  ;;  %v322_v53 = vand.u32 65535, %v292_v49  ;;  %v323_v54 = vshrl.u32 %v292_v49, 16  ;;  %v342_v31 = vmul.u32 %v1217_v34, %v288_v27 }
  0x49   : > { %v300_v51 = vand.u32 65535, %v296_v50  ;;  %v301_v52 = vshrl.u32 %v296_v50, 16  ;;  %vm392_vm4 = vweird.f32 %v1205_v4 }
  0x4a   : > { %v324_v59 = vmul.u32 %v322_v53, %v298_v47  ;;  %v325_v60 = vmul.u32 %v323_v54, %v298_v47  ;;  %v326_v61 = vmul.u32 %v322_v53, %v299_v48  ;;  %v327_v2 = vmul.u32 %v323_v54, %v299_v48 }
  0x4b   : > { %v302_v55 = vmul.u32 %v300_v51, %v298_v47  ;;  %v303_v56 = vmul.u32 %v301_v52, %v298_v47  ;;  %v304_v57 = vmul.u32 %v300_v51, %v299_v48  ;;  %v305_v62 = vmul.u32 %v301_v52, %v299_v48 }
  0x4c   : > { %868 = vset.pattern.permute.xlu0 %v1043_v35  ;;  %v328_v3 = vshll.u32 %v325_v60, 16  ;;  %v330_v5 = vshll.u32 %v326_v61, 16  ;;  %v329_v17 = vshrl.u32 %v325_v60, 16  ;;  %v331_v23 = vshrl.u32 %v326_v61, 16 }
  0x4d   : > { %v306_v63 = vshll.u32 %v303_v56, 16  ;;  %v308_v1 = vshll.u32 %v304_v57, 16  ;;  %v307_v12 = vshrl.u32 %v303_v56, 16  ;;  %v309_v20 = vshrl.u32 %v304_v57, 16 }
  0x4e   : > { %vm332_vm6 = vc.u32 %v324_v59, %v328_v3  ;;  %v334_v11 = vadd.s32 %v328_v3, %v324_v59 }
  0x4f   : > { %vm310_vm5 = vc.u32 %v302_v55, %v306_v63  ;;  %v312_v8 = vadd.s32 %v306_v63, %v302_v55  ;;  %v333_v14 = vsel %vm332_vm6, 1, %v1034_v0 }
  0x50   : > { %v311_v10 = vsel %vm310_vm5, 1, %v1034_v0  ;;  %v335_v18 = vadd.s32 %v333_v14, %v327_v2  ;;  %vm336_vm8 = vc.u32 %v334_v11, %v330_v5  ;;  %v338_v26 = vadd.s32 %v334_v11, %v330_v5 }
  0x51   : > { %v313_v13 = vadd.s32 %v311_v10, %v305_v62  ;;  %vm314_vm7 = vc.u32 %v312_v8, %v308_v1  ;;  %v337_v22 = vsel %vm336_vm8, 1, %v1034_v0 }
  0x52   : > { %v315_v15 = vsel %vm314_vm7, 1, %v1034_v0  ;;  %v339_v24 = vadd.s32 %v337_v22, %v335_v18 }
  0x53   : > { %v317_v21 = vadd.s32 %v315_v15, %v313_v13 }
  0x54   : > { %v340_v28 = vadd.s32 %v339_v24, %v329_v17 }
  0x55   : > { %v318_v25 = vadd.s32 %v317_v21, %v307_v12 }
  0x56   : > { %v341_v30 = vadd.s32 %v340_v28, %v331_v23 }
  0x57   : > { %v319_v29 = vadd.s32 %v318_v25, %v309_v20 }
  0x58   : > { %v345_v32 = vadd.s32 1, %v341_v30 }
  0x59   : > { %vm344_vm9 = vc.u32 %v319_v29, %v338_v26  ;;  %v343_v16 = vadd.s32 %v338_v26, %v319_v29 }
  0x5a   : > { %v346_v33 = vsel %vm344_vm9, %v345_v32, %v341_v30 }
  0x5b   : > { %v347_v35 = vadd.s32 %v346_v33, %v342_v31 }
  0x5d   : > { %v348_v36 = vadd.s32 536870912, %v347_v35 }
  0x5f   : > { %v349_v37 = vshrl.u32 %v348_v36, 30 }
  0x61   : > { %v350_v38 = vshll.u32 %v349_v37, 30  ;;  %v373_v1 = vsub.s32 4, %v349_v37 }
  0x63   : > { %v351_v0 = vsub.s32 %v347_v35, %v350_v38  ;;  %v374_v5 = vsel %vm251_vm12, %v373_v1, %v349_v37 }
  0x64   : > { %v376_v8 = vsel %vm1256_vm13, 0, %v374_v5 }
  0x65   : > { %vm352_vm10 = vcmp.lt.s32.totalorder %v351_v0, 0  ;;  %v353_v39 = vsub.s32 0, %v351_v0  ;;  %v393_v11 = vadd.s32 3, %v376_v8  ;;  %v548_v15 = vand.u32 3, %v376_v8 }
  0x67   : > { %v354_v40 = vsel %vm352_vm10, %v353_v39, %v351_v0  ;;  %v394_v14 = vand.u32 3, %v393_v11  ;;  %vm550_vm0 = vcmp.eq.s32.totalorder %v548_v15, 0  ;;  %vm553_vm1 = vcmp.eq.s32.totalorder %v548_v15, 2 }
  0x68   : > { %v355_v41 = vclz %v354_v40  ;;  %vm549_vm3 = vcmp.lt.s32.totalorder %v548_v15, 2 }
  0x69   : > { %vm396_vm14 = vcmp.eq.s32.totalorder %v394_v14, 0  ;;  %vm399_vm15 = vcmp.eq.s32.totalorder %v394_v14, 2  ;;  %vm395_vm2 = vcmp.lt.s32.totalorder %v394_v14, 2 }
  0x6a   : > { %v751_v42 = vadd.s32 4294967294, %v355_v41 }
  0x6c   : > { %vm752_vm11 = vcmp.lt.s32.totalorder %v751_v42, 0 }
  0x6d   : > { %v358_v43 = vsel %vm752_vm11, 0, %v751_v42 }
  0x6e   : > { %v359_v44 = vsub.s32 32, %v358_v43  ;;  %v360_v45 = vshll.u32 %v351_v0, %v358_v43  ;;  %v363_v46 = vsub.s32 4294967266, %v358_v43 }
  0x70   : > { %v361_v34 = vshrl.u32 %v343_v16, %v359_v44  ;;  %v364_v47 = vadd.s32 127, %v363_v46 }
  0x72   : > { %v362_v48 = vor.u32 %v361_v34, %v360_v45  ;;  %v365_v49 = vshll.u32 %v364_v47, 23 }
  0x74   : > { %v366_v50 = vor.u32 4788187, %v365_v49  ;;  %v369_v51 = vcvt.s32.f32 %v362_v48 }
  0x76   : > { %v367_v52 = vand.u32 2147483647, %v366_v50 }
  0x78   : > { %v370_v53 = vmul.f32 %v369_v51, %v367_v52 }
  0x7a   : > { %v371_v55 = vxor.u32 2147483648, %v370_v53 }
  0x7c   : > { %v372_v56 = vsel %vm251_vm12, %v371_v55, %v370_v53 }
  0x7d   : > { %v375_v57 = vsel %vm1256_vm13, %v1205_v4, %v372_v56 }
  0x7e   : > { %v377_v58 = vmul.f32 %v375_v57, %v375_v57 }
  0x80   : > { %v378_v59 = vmul.f32 -0.001358992, %v377_v58  ;;  %v385_v60 = vmul.f32 -0.00019511016, %v377_v58 }
  0x82   : > { %v386_v61 = vadd.f32 0.008332121, %v385_v60  ;;  %v379_v62 = vadd.f32 0.041655596, %v378_v59 }
  0x84   : > { %v387_v63 = vmul.f32 %v386_v61, %v377_v58  ;;  %v380_v2 = vmul.f32 %v379_v62, %v377_v58 }
  0x86   : > { %v388_v3 = vadd.f32 -0.16666654, %v387_v63  ;;  %v381_v7 = vadd.f32 -0.4999988, %v380_v2 }
  0x88   : > { %v389_v6 = vmul.f32 %v388_v3, %v377_v58  ;;  %v382_v9 = vmul.f32 %v381_v7, %v377_v58 }
  0x8a   : > { %v390_v10 = vadd.f32 1.0, %v389_v6  ;;  %v383_v12 = vadd.f32 1.0, %v382_v9 }
  0x8c   : > { %v391_v13 = vmul.f32 %v390_v10, %v375_v57  ;;  %v400_v18 = vxor.u32 2147483648, %v383_v12 }
  0x8e   : > { %v397_v17 = vxor.u32 2147483648, %v391_v13  ;;  %v401_v20 = vsel %vm399_vm15, %v400_v18, %v391_v13  ;;  %v555_v22 = vsel %vm553_vm1, %v400_v18, %v391_v13  ;;  %v591_v24 = vpop.permute.xlu2 %590 }
  0x90   : > { %v398_v19 = vsel %vm396_vm14, %v383_v12, %v397_v17  ;;  %v552_v21 = vsel %vm550_vm0, %v383_v12, %v397_v17 }
  0x91   : > { %v402_v23 = vsel %vm395_vm2, %v398_v19, %v401_v20  ;;  %v556_v25 = vsel %vm549_vm3, %v552_v21, %v555_v22 }
  0x92   : > { %v403_v27 = vsel %vm392_vm4, nan, %v402_v23  ;;  %v557_v29 = vsel %vm392_vm4, nan, %v556_v25 }
  0x93   : > { %v571_v30 = vperm.slane %v403_v27, 0  ;;  %v579_v31 = vperm.slane %v557_v29, 0  ;;  %v586_v32 = vperm.slane %v403_v27, 1  ;;  %v593_v38 = vperm.slane %v557_v29, 1 }
  0x94   : > { %v600_v41 = vperm.slane %v403_v27, 2  ;;  %v607_v43 = vperm.slane %v557_v29, 2  ;;  %v614_v46 = vperm.slane %v403_v27, 3  ;;  %v621_v34 = vperm.slane %v557_v29, 3 }
  0x95   : > { %v594_v42 = vmul.f32 %v593_v38, %v591_v24 }
  0x97   : > { %v598_v35 = vpop.permute.xlu2 %597 }
  0x98   : > { %v601_v45 = vmul.f32 %v600_v41, %v598_v35 }
  0xa0   : > { %v619_v49 = vpop.permute.xlu2 %618 }
  0xa1   : > { %v622_v54 = vmul.f32 %v621_v34, %v619_v49 }
  0xa5   : > { %v569_v26 = vpop.permute.xlu0 %568 }
  0xa6   : > { %v577_v28 = vpop.permute.xlu1 %576  ;;  %v572_v33 = vmul.f32 %v571_v30, %v569_v26 }
  0xa7   : > { %v580_v37 = vmul.f32 %v579_v31, %v577_v28 }
  0xad   : > { %v564_v36 = vpop.permute.xlu0 %563 }
  0xae   : > { %v573_v0 = vadd.f32 %v572_v33, %v564_v36 }
  0xaf   : > { %v584_v39 = vpop.permute.xlu1 %583 }
  0xb0   : > { %v587_v4 = vmul.f32 %v586_v32, %v584_v39  ;;  %v581_v40 = vadd.f32 %v580_v37, %v573_v0 }
  0xb2   : > { %v588_v16 = vadd.f32 %v587_v4, %v581_v40 }
  0xb4   : > { %v595_v44 = vadd.f32 %v594_v42, %v588_v16 }
  0xb6   : > { %v602_v47 = vadd.f32 %v601_v45, %v595_v44  ;;  %v605_v48 = vpop.permute.xlu0 %604 }
  0xb7   : > { %v608_v50 = vmul.f32 %v607_v43, %v605_v48 }
  0xb8   : > { %v612_v51 = vpop.permute.xlu1 %611 }
  0xb9   : > { %v615_v52 = vmul.f32 %v614_v46, %v612_v51  ;;  %v609_v53 = vadd.f32 %v608_v50, %v602_v47 }
  0xbb   : > { %v616_v55 = vadd.f32 %v615_v52, %v609_v53 }
  0xbd   : > { %v623_v56 = vadd.f32 %v622_v54, %v616_v55 }
  0xbf   : > { %624 = vst [vmem:[%s247_s29] sm:$0xf] %v623_v56 }
  0xc0   : > { %956 = shalt.err (!%p953_p13)
}
  0xc1   : > { %767 = dma.vmem_to_hbm [thread:$0]  (%p1157_p3), %s641_s30, 64, %s643_s5, %s626_s26  }
  0xc2 PF: > { %s1343_s11 = sld [smem:[#allocation11_spill]]  ;;  %p784_p0 = scmp.ge.s32.totalorder %s1031_s22, 2 }
  0xc4   : > { %p778_p5 = pnand %p784_p0, %p1128_p6 }
  0xc6   : > { %p779_p7 = pneg %p778_p5 }
  0xc8   : > { %s654_s27 = sand.u32 1, %s1343_s11  }
  0xc9   : > { %s655_s9 = scalar_lea.sflag [#allocation4], %s654_s27 }
  0xca   : > { %998 = dma.done.wait (%p779_p7), %s655_s9, 64  }
  0xcb   : > { %1000 = vsyncadd (%p779_p7), %s655_s9, 4294967232  ;;  %s21_s22 = sadd.s32 1, %s1031_s22   ;;  %s1345_s10 = sld [smem:[#allocation13_spill]] }
  0xcc   : > { %p18_p9 = scmp.ge.s32.totalorder %s21_s22, 6   ;;  %s1346_s13 = sld [smem:[#allocation15_spill]] }
  0xcd   : > { %s1347_s15 = smov %s1007_s16  ;;  %s1348_s16 = smov %s1011_s17 }
  0xce   : > { %s1349_s17 = smov %s1174_s2  ;;  %s1350_s18 = smov %s1023_s20 }
  0xcf   : > { %s1351_s19 = smov %s1027_s21  ;;  %20 = sbr.rel (!%p18_p9) target bundleno = 11 (0xb), region = 85 }
  0xd1   : > { %s1352_s20 = smov %s1345_s10 }
  0xd2   : > { %s1353_s21 = smov %s1346_s13 }
  0xd4   :  { %661 = vsyncpa [#allocation3], 1 }
  0xd5   :  { %663 = vsyncpa [#allocation3 + $0x1], 1 }
  0xd6   :  { %664 = vsyncpa [#allocation6], 1 }
  0xd7   :  { %665 = vsyncpa [#allocation4], 1 }
  0xd8   :  { %667 = vsyncpa [#allocation4 + $0x1], 1 }

</bundles_post_ra>
